<compile_context>
chip_gen: v7x
topology: tpu7x:2x2x1
jax: 0.10.0
libtpu: 0.0.40
codegen_flags: <defaults>
</compile_context>

<pallas_src>
import functools
import math

import jax
import jax.numpy as jnp
from jax.experimental import pallas as pl
from jax.experimental.pallas import tpu as pltpu

_MIB = 1024 * 1024


# ------------------------------- kernels -------------------------------------

def _rowwise_kernel(x_ref, y_ref, g_ref, b_ref, o_ref, *, d, eps):
    """One LayerNorm row per tile row; blocks are (tm, D), D >= 128 (or awkward D)."""
    s = x_ref[...].astype(jnp.float32) + y_ref[...].astype(jnp.float32)      # (tm, D)
    inv_d = jnp.float32(1.0 / d)
    # Fused single sweep: E[s] and E[s^2] together (f32 accumulation).
    mean = jnp.sum(s, axis=-1, keepdims=True) * inv_d                        # (tm, 1)
    ex2 = jnp.sum(s * s, axis=-1, keepdims=True) * inv_d
    var = jnp.maximum(ex2 - mean * mean, 0.0)                                # biased var
    inv = jax.lax.rsqrt(var + jnp.float32(eps))                              # EUP
    out = (s - mean) * inv * g_ref[...].astype(jnp.float32) + b_ref[...].astype(jnp.float32)
    o_ref[...] = out.astype(o_ref.dtype)


def _lane_packed_kernel(x_ref, y_ref, g_ref, b_ref, seg_ref, o_ref, *, d, eps):
    """d < 128 and 128 % d == 0: k = 128//d logical rows packed per 128-lane row.

    Segmented per-d-lane-group sum+broadcast is one (tm,128)x(128,128) matmul with a
    block-diagonal 0/1 matrix (exact in HIGHEST precision), keeping loads/stores lane-dense.
    """
    s = x_ref[...].astype(jnp.float32) + y_ref[...].astype(jnp.float32)      # (tm, 128)
    seg = seg_ref[...]                                                       # (128, 128) 0/1 f32
    inv_d = jnp.float32(1.0 / d)
    mean = jnp.dot(s, seg, precision=jax.lax.Precision.HIGHEST,
                   preferred_element_type=jnp.float32) * inv_d               # segment-sum, broadcast
    c = s - mean
    var = jnp.dot(c * c, seg, precision=jax.lax.Precision.HIGHEST,
                  preferred_element_type=jnp.float32) * inv_d                # stable two-pass var
    inv = jax.lax.rsqrt(var + jnp.float32(eps))
    out = c * inv * g_ref[...].astype(jnp.float32) + b_ref[...].astype(jnp.float32)
    o_ref[...] = out.astype(o_ref.dtype)


# ----------------------------- tile selection ---------------------------------

def _vmem_capacity_bytes():
    try:
        info = pltpu.get_tpu_info()
        cap = getattr(info, "vmem_capacity_bytes", None)
        if cap:
            return int(cap)
    except Exception:
        pass
    return 128 * _MIB  # v5e / v6e physical VMEM


def _round_up(x, m):
    return ((x + m - 1) // m) * m


def _pick_tile_and_limit(dp, itemsize, n_rows, row_align):
    """VMEM-budget-derived row tile + explicit scoped-VMEM limit for CompilerParams."""
    cap = _vmem_capacity_bytes()                       # 64 MiB on v7x, 128 MiB on v5e/v6e
    budget = min(cap // 2, 64 * _MIB) - _MIB           # working-set target (pipelined tiles + temps)
    # per streamed row: (2 inputs + 1 output) * double buffer * itemsize + ~4 f32 temporaries
    per_row = 6 * dp * itemsize + 4 * dp * 4
    tm = max(budget // per_row, row_align)
    tm = min(tm, 1024)                                 # amortize ~0.35us/step, keep per-step latency sane
    tm = (tm // row_align) * row_align
    tm = max(tm, row_align)
    tm = min(tm, _round_up(n_rows, row_align))         # don't exceed (padded) problem size
    vmem_limit = min(cap - 16 * _MIB, budget + 33 * _MIB)
    vmem_limit = max(vmem_limit, 32 * _MIB)            # never below the usual scoped default
    return int(tm), int(vmem_limit)


# -------------------------------- wrapper --------------------------------------

def add_layer_norm(x, mha_output, gamma, beta, *, eps=1e-5):
    """x, mha_output: (..., d_model).  gamma, beta: (d_model,)."""
    assert x.shape == mha_output.shape
    *lead, D = x.shape
    M = math.prod(lead) if lead else 1
    x2d = x.reshape(M, D)
    y2d = mha_output.reshape(M, D)

    itemsize = jnp.dtype(x.dtype).itemsize
    row_align = 16 if itemsize == 2 else 8             # bf16/fp16 sublane packing

    lane_packed = (D < 128) and (128 % D == 0)
    k = (128 // D) if lane_packed else 1
    Dp = 128 if lane_packed else D
    n_rows = -(-M // k)                                 # rows in the kernel layout

    tm, vmem_limit = _pick_tile_and_limit(Dp, itemsize, n_rows, row_align)
    n_rows_p = _round_up(n_rows, tm)
    m_pad = n_rows_p * k                                # padded rows in the original layout

    if m_pad != M:                                      # pad rows (mem-bound: essentially free)
        pad = m_pad - M
        x2d = jnp.pad(x2d, ((0, pad), (0, 0)))
        y2d = jnp.pad(y2d, ((0, pad), (0, 0)))
    xk = x2d.reshape(n_rows_p, Dp)
    yk = y2d.reshape(n_rows_p, Dp)

    if lane_packed:
        g = jnp.tile(gamma.reshape(-1), k).reshape(1, Dp)
        b = jnp.tile(beta.reshape(-1), k).reshape(1, Dp)
        lane = jnp.arange(128, dtype=jnp.int32)
        seg = (lane[:, None] // D == lane[None, :] // D).astype(jnp.float32)  # block-diag 0/1
        kernel = functools.partial(_lane_packed_kernel, d=D, eps=eps)
        in_arrays = (xk, yk, g, b, seg)
        in_specs = [
            pl.BlockSpec((tm, Dp), lambda i: (i, 0)),
            pl.BlockSpec((tm, Dp), lambda i: (i, 0)),
            pl.BlockSpec((1, Dp), lambda i: (0, 0)),
            pl.BlockSpec((1, Dp), lambda i: (0, 0)),
            pl.BlockSpec((128, 128), lambda i: (0, 0)),
        ]
    else:
        g = gamma.reshape(1, Dp)
        b = beta.reshape(1, Dp)
        kernel = functools.partial(_rowwise_kernel, d=D, eps=eps)
        in_arrays = (xk, yk, g, b)
        in_specs = [
            pl.BlockSpec((tm, Dp), lambda i: (i, 0)),
            pl.BlockSpec((tm, Dp), lambda i: (i, 0)),
            pl.BlockSpec((1, Dp), lambda i: (0, 0)),
            pl.BlockSpec((1, Dp), lambda i: (0, 0)),
        ]

    out = pl.pallas_call(
        kernel,
        out_shape=jax.ShapeDtypeStruct((n_rows_p, Dp), x.dtype),
        grid=(n_rows_p // tm,),
        in_specs=in_specs,
        out_specs=pl.BlockSpec((tm, Dp), lambda i: (i, 0)),
        compiler_params=pltpu.CompilerParams(
            dimension_semantics=("parallel",),
            vmem_limit_bytes=vmem_limit,
        ),
    )(*in_arrays)

    out2d = out.reshape(m_pad, D)[:M]
    return out2d.reshape(*lead, D)


# ------------------------------- reference -------------------------------------

def reference(x, mha_output, gamma, beta, *, eps=1e-5):
    s = (x + mha_output).astype(jnp.float32)
    mean = jnp.mean(s, axis=-1, keepdims=True)
    var = jnp.mean((s - mean) ** 2, axis=-1, keepdims=True)
    out = (s - mean) / jnp.sqrt(var + eps) * gamma + beta
    return out.astype(x.dtype)


# ---------------------------------- main ----------------------------------------

if __name__ == "__main__":
    B, S, d_model = 2, 8, 32

    key = jax.random.PRNGKey(0)
    k0, k1, k2, k3 = jax.random.split(key, 4)

    x = jax.random.normal(k0, (B, S, d_model), jnp.float32)
    mha_output = jax.random.normal(k1, (B, S, d_model), jnp.float32)
    # nn.LayerNorm default init is weight=1 / bias=0; perturb so the affine path is exercised.
    gamma = jnp.ones((d_model,), jnp.float32) + 0.05 * jax.random.normal(k2, (d_model,), jnp.float32)
    beta = 0.05 * jax.random.normal(k3, (d_model,), jnp.float32)

    out = add_layer_norm(x, mha_output, gamma, beta)
    out = jax.block_until_ready(out)

    out_ref = reference(x, mha_output, gamma, beta)
    assert out.shape == (B, S, d_model)
    err = float(jnp.max(jnp.abs(out - out_ref)))
    assert jnp.allclose(out, out_ref, atol=1e-4, rtol=1e-4), err

    print("KERNEL_OK")
</pallas_src>

<mosaic_0001>
module attributes {stable_mosaic.version = 11 : i64} {
  func.func @_lane_packed_kernel(%arg0: i32, %arg1: memref<8x128xf32, #tpu.memory_space<vmem>>, %arg2: memref<8x128xf32, #tpu.memory_space<vmem>>, %arg3: memref<1x128xf32, #tpu.memory_space<vmem>>, %arg4: memref<1x128xf32, #tpu.memory_space<vmem>>, %arg5: memref<128x128xf32, #tpu.memory_space<vmem>>, %arg6: memref<8x128xf32, #tpu.memory_space<vmem>>) attributes {dimension_semantics = [#tpu.dimension_semantics<parallel>], iteration_bounds = array<i64: 1>, scalar_prefetch = 0 : i64, scratch_operands = 0 : i64, tpu.core_type = #tpu.core_type<tc>, window_params = [{transform_indices = @transform_0, window_bounds = array<i64: 8, 128>}, {transform_indices = @transform_1, window_bounds = array<i64: 8, 128>}, {pipeline_mode = #tpu.pipeline_mode<synchronous>, transform_indices = @transform_2, window_bounds = array<i64: 1, 128>}, {pipeline_mode = #tpu.pipeline_mode<synchronous>, transform_indices = @transform_3, window_bounds = array<i64: 1, 128>}, {pipeline_mode = #tpu.pipeline_mode<synchronous>, transform_indices = @transform_4, window_bounds = array<i64: 128, 128>}, {transform_indices = @transform_5, window_bounds = array<i64: 8, 128>}]} {
    %c0 = arith.constant 0 : index
    %c0_0 = arith.constant 0 : index
    %0 = vector.load %arg1[%c0, %c0_0] : memref<8x128xf32, #tpu.memory_space<vmem>>, vector<8x128xf32>
    %c0_1 = arith.constant 0 : index
    %c0_2 = arith.constant 0 : index
    %1 = vector.load %arg2[%c0_1, %c0_2] : memref<8x128xf32, #tpu.memory_space<vmem>>, vector<8x128xf32>
    %2 = arith.addf %0, %1 : vector<8x128xf32>
    %c0_3 = arith.constant 0 : index
    %c0_4 = arith.constant 0 : index
    %3 = vector.load %arg5[%c0_3, %c0_4] : memref<128x128xf32, #tpu.memory_space<vmem>>, vector<128x128xf32>
    %cst = arith.constant dense<0.000000e+00> : vector<8x128xf32>
    %4 = tpu.matmul %2, %3, %cst {dimension_numbers = #tpu.dot_dimension_numbers<[1], [0], [0], [1], [0, 0, 1, 1], [], []>, precision = #tpu.contract_precision<fp32>} : vector<8x128xf32>, vector<128x128xf32>, vector<8x128xf32> -> vector<8x128xf32>
    %cst_5 = arith.constant 3.125000e-02 : f32
    %5 = vector.broadcast %cst_5 : f32 to vector<8x128xf32>
    %6 = arith.mulf %4, %5 : vector<8x128xf32>
    %7 = arith.subf %2, %6 : vector<8x128xf32>
    %8 = arith.mulf %7, %7 : vector<8x128xf32>
    %cst_6 = arith.constant dense<0.000000e+00> : vector<8x128xf32>
    %9 = tpu.matmul %8, %3, %cst_6 {dimension_numbers = #tpu.dot_dimension_numbers<[1], [0], [0], [1], [0, 0, 1, 1], [], []>, precision = #tpu.contract_precision<fp32>} : vector<8x128xf32>, vector<128x128xf32>, vector<8x128xf32> -> vector<8x128xf32>
    %cst_7 = arith.constant 3.125000e-02 : f32
    %10 = vector.broadcast %cst_7 : f32 to vector<8x128xf32>
    %11 = arith.mulf %9, %10 : vector<8x128xf32>
    %cst_8 = arith.constant 9.99999974E-6 : f32
    %12 = vector.broadcast %cst_8 : f32 to vector<8x128xf32>
    %13 = arith.addf %11, %12 : vector<8x128xf32>
    %14 = math.rsqrt %13 : vector<8x128xf32>
    %15 = arith.mulf %7, %14 : vector<8x128xf32>
    %c0_9 = arith.constant 0 : index
    %c0_10 = arith.constant 0 : index
    %16 = vector.load %arg3[%c0_9, %c0_10] : memref<1x128xf32, #tpu.memory_space<vmem>>, vector<1x128xf32>
    %17 = vector.broadcast %16 : vector<1x128xf32> to vector<8x128xf32>
    %18 = arith.mulf %15, %17 : vector<8x128xf32>
    %c0_11 = arith.constant 0 : index
    %c0_12 = arith.constant 0 : index
    %19 = vector.load %arg4[%c0_11, %c0_12] : memref<1x128xf32, #tpu.memory_space<vmem>>, vector<1x128xf32>
    %20 = vector.broadcast %19 : vector<1x128xf32> to vector<8x128xf32>
    %21 = arith.addf %18, %20 : vector<8x128xf32>
    %c0_13 = arith.constant 0 : index
    %c0_14 = arith.constant 0 : index
    %22 = vector.load %arg6[%c0_13, %c0_14] : memref<8x128xf32, #tpu.memory_space<vmem>>, vector<8x128xf32>
    tpu.vector_store %arg6[%c0_13, %c0_14], %21 {strides = array<i32>} : memref<8x128xf32, #tpu.memory_space<vmem>>, vector<8x128xf32>,
    return
  }
  func.func @transform_0(%arg0: i32) -> (i32, i32) {
    %c0_i32 = arith.constant 0 : i32
    %c0_i32_0 = arith.constant 0 : i32
    return %arg0, %c0_i32 : i32, i32
  }
  func.func @transform_1(%arg0: i32) -> (i32, i32) {
    %c0_i32 = arith.constant 0 : i32
    %c0_i32_0 = arith.constant 0 : i32
    return %arg0, %c0_i32 : i32, i32
  }
  func.func @transform_2(%arg0: i32) -> (i32, i32) {
    %c0_i32 = arith.constant 0 : i32
    %c0_i32_0 = arith.constant 0 : i32
    %c0_i32_1 = arith.constant 0 : i32
    return %c0_i32, %c0_i32_0 : i32, i32
  }
  func.func @transform_3(%arg0: i32) -> (i32, i32) {
    %c0_i32 = arith.constant 0 : i32
    %c0_i32_0 = arith.constant 0 : i32
    %c0_i32_1 = arith.constant 0 : i32
    return %c0_i32, %c0_i32_0 : i32, i32
  }
  func.func @transform_4(%arg0: i32) -> (i32, i32) {
    %c0_i32 = arith.constant 0 : i32
    %c0_i32_0 = arith.constant 0 : i32
    %c0_i32_1 = arith.constant 0 : i32
    return %c0_i32, %c0_i32_0 : i32, i32
  }
  func.func @transform_5(%arg0: i32) -> (i32, i32) {
    %c0_i32 = arith.constant 0 : i32
    %c0_i32_0 = arith.constant 0 : i32
    return %arg0, %c0_i32 : i32, i32
  }
}

</mosaic_0001>

<bundles_post_ra>
// kernel: tpu_custom_call.1
= control target key start
LH: loop header
LB: loop body
LE: loop exit
PB: predicated region body
PF: predicated region fallthrough
CT: control target
= control target key end

     0   :  { %10 = vsyncpa [#allocation3], 0  ;;  %s3014_s0 = inlined_call_operand.hbm [shape: f32[8,128], index: 0, kind: input, shape index: {}]   ;;  %s3015_s1 = inlined_call_operand.hbm [shape: f32[8,128], index: 1, kind: input, shape index: {}]   ;;  %s3016_s2 = inlined_call_operand.hbm [shape: f32[1,128], index: 2, kind: input, shape index: {}]   ;;  %s3017_s3 = inlined_call_operand.hbm [shape: f32[1,128], index: 3, kind: input, shape index: {}]   ;;  %s3018_s4 = inlined_call_operand.hbm [shape: f32[128,128], index: 4, kind: input, shape index: {}]   ;;  %s3019_s5 = inlined_call_operand.hbm [shape: f32[8,128], index: 5, kind: output, shape index: {}]  }
   0x1   :  { %11 = vsyncpa [#allocation6], 0 }
   0x2   :  { %12 = vsyncpa [#allocation9], 0 }
   0x3   :  { %13 = vsyncpa [#allocation4], 0  ;;  %s2510_s18 = smov [#allocation5]   ;;  %s2511_s20 = smov [#allocation8]  }
   0x4   :  { %s30_s19 = sshll.u32 %s2510_s18, 4  ;;  %s50_s21 = sshll.u32 %s2511_s20, 4  ;;  %s31_s19 = int_to_ptr.vmem [resolvable:$true] %s30_s19  ;;  %s51_s21 = int_to_ptr.vmem [resolvable:$true] %s50_s21 }
   0x5   :  { %s2370_s24 = scalar_lea.hbm %s3015_s1, 128 }
   0x6   :  { %p2371_p0 = scmp.ne.s32.totalorder %s3015_s1, %s2370_s24  ;;  %p2374_p1 = scmp.lt.u32.totalorder %s2370_s24, %s3015_s1 }
   0x8   :  { %p2376_p2 = pnand %p2374_p1, %p2371_p0 }
   0xa   :  { %2379 = shalt.err (!%p2376_p2)
}
   0xb   :  { %s2380_s29 = scalar_lea.vmem %s31_s19, 128  ;;  %p2385_p4 = scmp.lt.s32.totalorder %s31_s19, %s31_s19 }
   0xc   :  { %p2381_p3 = scmp.ne.s32.totalorder %s31_s19, %s2380_s29  ;;  %p2386_p5 = scmp.lt.s32.totalorder %s2380_s29, %s2380_s29 }
   0xe   :  { %p2387_p6 = por %p2386_p5, %p2385_p4 }
  0x10   :  { %p2388_p7 = pnand %p2387_p6, %p2381_p3 }
  0x12   :  { %2391 = shalt.err (!%p2388_p7)
}
  0x13   :  { %33 = dma.hbm_to_vmem [thread:$0]  %s3015_s1, 128, %s31_s19, [#allocation6]  }
  0x14   :  { %s2392_s9 = scalar_lea.hbm %s3017_s3, 16 }
  0x15   :  { %p2393_p8 = scmp.ne.s32.totalorder %s3017_s3, %s2392_s9  ;;  %p2396_p9 = scmp.lt.u32.totalorder %s2392_s9, %s3017_s3 }
  0x17   :  { %p2398_p10 = pnand %p2396_p9, %p2393_p8 }
  0x19   :  { %2401 = shalt.err (!%p2398_p10)
}
  0x1a   :  { %s2402_s14 = scalar_lea.vmem %s51_s21, 16  ;;  %s2406_s15 = scalar_lea.vmem %s51_s21, 32 }
  0x1b   :  { %p2403_p11 = scmp.ne.s32.totalorder %s51_s21, %s2402_s14  ;;  %p2407_p12 = scmp.lt.s32.totalorder %s51_s21, %s51_s21 }
  0x1c   :  { %p2408_p13 = scmp.lt.s32.totalorder %s2406_s15, %s2402_s14 }
  0x1e   :  { %p2409_p0 = por %p2408_p13, %p2407_p12 }
  0x20   :  { %p2410_p1 = pnand %p2409_p0, %p2403_p11 }
  0x22   :  { %2413 = shalt.err (!%p2410_p1)
}
  0x23   :  { %53 = dma.hbm_to_vmem [thread:$0]  %s3017_s3, 16, %s51_s21, [#allocation9]  }
  0x24   :  { %s2512_s17 = smov [#allocation2]   ;;  %s2513_s19 = smov [#allocation7]  }
  0x25   :  { %s20_s18 = sshll.u32 %s2512_s17, 4  ;;  %s40_s20 = sshll.u32 %s2513_s19, 4  ;;  %s21_s18 = int_to_ptr.vmem [resolvable:$true] %s20_s18  ;;  %s41_s20 = int_to_ptr.vmem [resolvable:$true] %s40_s20 }
  0x26   :  { %s2414_s24 = scalar_lea.hbm %s3014_s0, 128 }
  0x27   :  { %p2415_p2 = scmp.ne.s32.totalorder %s3014_s0, %s2414_s24  ;;  %p2418_p3 = scmp.lt.u32.totalorder %s2414_s24, %s3014_s0 }
  0x29   :  { %p2420_p4 = pnand %p2418_p3, %p2415_p2 }
  0x2b   :  { %2423 = shalt.err (!%p2420_p4)
}
  0x2c   :  { %s2424_s3 = scalar_lea.vmem %s21_s18, 128  ;;  %p2429_p6 = scmp.lt.s32.totalorder %s21_s18, %s21_s18 }
  0x2d   :  { %p2425_p5 = scmp.ne.s32.totalorder %s21_s18, %s2424_s3  ;;  %p2430_p7 = scmp.lt.s32.totalorder %s2424_s3, %s2424_s3 }
  0x2f   :  { %p2431_p8 = por %p2430_p7, %p2429_p6 }
  0x31   :  { %p2432_p9 = pnand %p2431_p8, %p2425_p5 }
  0x33   :  { %2435 = shalt.err (!%p2432_p9)
}
  0x34   :  { %23 = dma.hbm_to_vmem [thread:$0]  %s3014_s0, 128, %s21_s18, [#allocation3]  }
  0x35   :  { %s2436_s7 = scalar_lea.hbm %s3016_s2, 16 }
  0x36   :  { %p2437_p10 = scmp.ne.s32.totalorder %s3016_s2, %s2436_s7  ;;  %p2440_p11 = scmp.lt.u32.totalorder %s2436_s7, %s3016_s2 }
  0x38   :  { %p2442_p12 = pnand %p2440_p11, %p2437_p10 }
  0x3a   :  { %2445 = shalt.err (!%p2442_p12)
}
  0x3b   :  { %s2446_s12 = scalar_lea.vmem %s41_s20, 16  ;;  %s2450_s13 = scalar_lea.vmem %s41_s20, 32 }
  0x3c   :  { %p2447_p13 = scmp.ne.s32.totalorder %s41_s20, %s2446_s12  ;;  %p2451_p0 = scmp.lt.s32.totalorder %s41_s20, %s41_s20 }
  0x3d   :  { %p2452_p1 = scmp.lt.s32.totalorder %s2450_s13, %s2446_s12 }
  0x3f   :  { %p2453_p2 = por %p2452_p1, %p2451_p0 }
  0x41   :  { %p2454_p3 = pnand %p2453_p2, %p2447_p13 }
  0x43   :  { %2457 = shalt.err (!%p2454_p3)
}
  0x44   :  { %43 = dma.hbm_to_vmem [thread:$0]  %s3016_s2, 16, %s41_s20, [#allocation6]  }
  0x45   :  { %s2514_s15 = smov [#allocation10]   ;;  %s2458_s18 = scalar_lea.hbm %s3018_s4, 2048 }
  0x46   :  { %s59_s1 = sshll.u32 %s2514_s15, 4  ;;  %p2459_p4 = scmp.ne.s32.totalorder %s3018_s4, %s2458_s18  ;;  %s60_s1 = int_to_ptr.vmem [resolvable:$true] %s59_s1 }
  0x47   :  { %p2462_p5 = scmp.lt.u32.totalorder %s2458_s18, %s3018_s4 }
  0x49   :  { %p2464_p6 = pnand %p2462_p5, %p2459_p4 }
  0x4b   :  { %2467 = shalt.err (!%p2464_p6)
}
  0x4c   :  { %s2468_s25 = scalar_lea.vmem %s60_s1, 2048  ;;  %p2473_p8 = scmp.lt.s32.totalorder %s60_s1, %s60_s1 }
  0x4d   :  { %p2469_p7 = scmp.ne.s32.totalorder %s60_s1, %s2468_s25  ;;  %p2474_p9 = scmp.lt.s32.totalorder %s2468_s25, %s2468_s25 }
  0x4f   :  { %p2475_p10 = por %p2474_p9, %p2473_p8 }
  0x51   :  { %p2476_p11 = pnand %p2475_p10, %p2469_p7 }
  0x53   :  { %2479 = shalt.err (!%p2476_p11)
}
  0x54   :  { %s2515_s2 = smov 128   ;;  %s2516_s20 = smov 8  }
  0x55   :  { %65 = dma.hbm_to_vmem [thread:$0]  %s3018_s4, 2048, %s60_s1, [#allocation9], %s2515_s2, %s2515_s2, %s2516_s20  }
  0x56   :  { %2502 = dma.done.wait [#allocation3], 128  }
  0x57   :  { %2503 = vsyncadd [#allocation3], 4294967168 }
  0x58   :  { %2504 = dma.done.wait [#allocation6], 144  }
  0x59   :  { %2505 = vsyncadd [#allocation6], 4294967152 }
  0x5a   :  { %2506 = dma.done.wait [#allocation9], 2064  }
  0x5b   :  { %2507 = vsyncadd [#allocation9], 4294965232  ;;  %v2517_v0 = vmov 0.0|0.0   ;;  %vm2518_vm0 = vmmov 0   ;;  %v2519_v1 = vmov 0.0   ;;  %v84_v2 = vld [vmem:[#allocation10] sm:$0xff] }
  0x5c   :  { %2049 = vmatprep.subr.bf16.mxu0 %v2517_v0  ;;  %1661 = vmatprep.mubr.msk.f32.mxu0 %vm2518_vm0, %v2519_v1  ;;  %v85_v3 = vld [vmem:[#allocation10 + $0x8] sm:$0xff]  ;;  %v86_v4 = vld [vmem:[#allocation10 + $0x10] sm:$0xff]  ;;  %v101_v5 = vand.u32 4294901760, %v84_v2  ;;  %v87_v7 = vld [vmem:[#allocation10 + $0x18] sm:$0xff]  ;;  %s2520_s4 = smov [#allocation11]  }
  0x5d   :  { %2193 = vmatprep.subr.bf16.mxu1 %v2517_v0  ;;  %1871 = vmatprep.mubr.msk.f32.mxu1 %vm2518_vm0, %v2519_v1  ;;  %v104_v6 = vand.u32 4294901760, %v85_v3  ;;  %v107_v8 = vand.u32 4294901760, %v86_v4  ;;  %v110_v9 = vand.u32 4294901760, %v87_v7  ;;  %v88_v10 = vld [vmem:[#allocation10 + $0x20] sm:$0xff]  ;;  %v89_v11 = vld [vmem:[#allocation10 + $0x28] sm:$0xff]  ;;  %v90_v16 = vld [vmem:[#allocation10 + $0x30] sm:$0xff] }
  0x5e   :  { %v113_v14 = vand.u32 4294901760, %v88_v10  ;;  %v116_v15 = vand.u32 4294901760, %v89_v11  ;;  %v91_v17 = vld [vmem:[#allocation10 + $0x38] sm:$0xff]  ;;  %v81_v18 = vld [vmem:[#allocation2] sm:$0xff]  ;;  %v119_v21 = vand.u32 4294901760, %v90_v16  ;;  %v92_v23 = vld [vmem:[#allocation10 + $0x40] sm:$0xff]  ;;  %v2636_v35 = vsub.f32 %v84_v2, %v101_v5 }
  0x5f   :  { %v2617_v12 = vpack.c.bf16 %v104_v6, %v101_v5  ;;  %v2620_v13 = vpack.c.bf16 %v110_v9, %v107_v8  ;;  %v82_v19 = vld [vmem:[#allocation5] sm:$0xff]  ;;  %v122_v22 = vand.u32 4294901760, %v91_v17  ;;  %v93_v24 = vld [vmem:[#allocation10 + $0x48] sm:$0xff]  ;;  %v125_v27 = vand.u32 4294901760, %v92_v23  ;;  %v96_v29 = vld [vmem:[#allocation10 + $0x60] sm:$0xff]  ;;  %s1412_s28 = sshll.u32 %s2520_s4, 4  ;;  %s1413_s28 = int_to_ptr.vmem [resolvable:$true] %s1412_s28 }
  0x60   :  { %v2626_v20 = vpack.c.bf16 %v116_v15, %v113_v14  ;;  %v2630_v25 = vadd.f32 %v82_v19, %v81_v18  ;;  %v94_v26 = vld [vmem:[#allocation10 + $0x50] sm:$0xff]  ;;  %v95_v28 = vld [vmem:[#allocation10 + $0x58] sm:$0xff]  ;;  %v97_v30 = vld [vmem:[#allocation10 + $0x68] sm:$0xff]  ;;  %v128_v32 = vand.u32 4294901760, %v93_v24  ;;  %v2638_v36 = vsub.f32 %v85_v3, %v104_v6  ;;  %s2480_s3 = scalar_lea.vmem %s1413_s28, 128  ;;  %p2485_p13 = scmp.lt.s32.totalorder %s1413_s28, %s1413_s28 }
  0x61   :  { %2051 = vmatpush3.bf16.msra.mxu0 %v2617_v12  ;;  %2195 = vmatpush3.bf16.msra.mxu1 %v2617_v12  ;;  %v2634_v31 = vpack.c.bf16 %v122_v22, %v119_v21  ;;  %v98_v33 = vld [vmem:[#allocation10 + $0x70] sm:$0xff]  ;;  %v99_v34 = vld [vmem:[#allocation10 + $0x78] sm:$0xff]  ;;  %v131_v38 = vand.u32 4294901760, %v94_v26  ;;  %v134_v39 = vand.u32 4294901760, %v95_v28  ;;  %v137_v40 = vand.u32 4294901760, %v96_v29  ;;  %p2481_p12 = scmp.ne.s32.totalorder %s1413_s28, %s2480_s3  ;;  %p2486_p0 = scmp.lt.s32.totalorder %s2480_s3, %s2480_s3 }
  0x62   :  { %2052 = vmatprep.subr.bf16.mxu0 %v2517_v0  ;;  %2196 = vmatprep.subr.bf16.mxu1 %v2517_v0  ;;  %v2643_v37 = vand.u32 4294901760, %v2630_v25  ;;  %v140_v41 = vand.u32 4294901760, %v97_v30  ;;  %v143_v42 = vand.u32 4294901760, %v98_v33  ;;  %v146_v43 = vand.u32 4294901760, %v99_v34 }
  0x63   :  { %v2646_v44 = vsub.f32 %v86_v4, %v107_v8  ;;  %v2648_v45 = vsub.f32 %v87_v7, %v110_v9  ;;  %v2651_v46 = vpack.c.bf16 %v128_v32, %v125_v27  ;;  %v194_v47 = vand.u32 4294901760, %v2636_v35  ;;  %p2487_p1 = por %p2486_p0, %p2485_p13 }
  0x64   :  { %v201_v48 = vand.u32 4294901760, %v2638_v36  ;;  %v2655_v49 = vsub.f32 %v88_v10, %v113_v14  ;;  %v2661_v50 = vsub.f32 %v2630_v25, %v2643_v37  ;;  %v2664_v51 = vpack.c.bf16 %v134_v39, %v131_v38 }
  0x65   :  { %2054 = vmatpush3.bf16.msra.mxu0 %v2620_v13  ;;  %2198 = vmatpush3.bf16.msra.mxu1 %v2620_v13  ;;  %v2666_v52 = vpack.c.bf16 %v140_v41, %v137_v40  ;;  %v2668_v53 = vpack.c.bf16 %v146_v43, %v143_v42  ;;  %v208_v54 = vand.u32 4294901760, %v2646_v44  ;;  %v215_v55 = vand.u32 4294901760, %v2648_v45  ;;  %p2488_p2 = pnand %p2487_p1, %p2481_p12 }
  0x66   :  { %2055 = vmatprep.subr.bf16.mxu0 %v2517_v0  ;;  %2199 = vmatprep.subr.bf16.mxu1 %v2517_v0  ;;  %v2672_v56 = vsub.f32 %v89_v11, %v116_v15  ;;  %v195_v57 = vsub.f32 %v2636_v35, %v194_v47  ;;  %v202_v58 = vsub.f32 %v2638_v36, %v201_v48  ;;  %v222_v59 = vand.u32 4294901760, %v2655_v49 }
  0x67   :  { %v2678_v60 = vsub.f32 %v90_v16, %v119_v21  ;;  %v183_v61 = vand.u32 4294901760, %v2661_v50  ;;  %v2683_v62 = vsub.f32 %v91_v17, %v122_v22  ;;  %v2685_v63 = vsub.f32 %v92_v23, %v125_v27 }
  0x68   :  { %v2687_v2 = vsub.f32 %v93_v24, %v128_v32  ;;  %v2690_v3 = vsub.f32 %v94_v26, %v131_v38  ;;  %v2692_v4 = vsub.f32 %v95_v28, %v134_v39  ;;  %v2694_v5 = vsub.f32 %v96_v29, %v137_v40 }
  0x69   :  { %2057 = vmatpush3.bf16.msra.mxu0 %v2626_v20  ;;  %2201 = vmatpush3.bf16.msra.mxu1 %v2626_v20  ;;  %v2696_v6 = vsub.f32 %v97_v30, %v140_v41  ;;  %v209_v7 = vsub.f32 %v2646_v44, %v208_v54  ;;  %v229_v8 = vand.u32 4294901760, %v2672_v56  ;;  %v2700_v9 = vsub.f32 %v98_v33, %v143_v42 }
  0x6a   :  { %2058 = vmatprep.subr.bf16.mxu0 %v2517_v0  ;;  %2202 = vmatprep.subr.bf16.mxu1 %v2517_v0  ;;  %v2702_v10 = vsub.f32 %v99_v34, %v146_v43  ;;  %v196_v11 = vand.u32 4294901760, %v195_v57  ;;  %v203_v14 = vand.u32 4294901760, %v202_v58  ;;  %v216_v15 = vsub.f32 %v2648_v45, %v215_v55 }
  0x6b   :  { %v236_v16 = vand.u32 4294901760, %v2678_v60  ;;  %v184_v17 = vsub.f32 %v2661_v50, %v183_v61  ;;  %v243_v18 = vand.u32 4294901760, %v2683_v62  ;;  %v250_v19 = vand.u32 4294901760, %v2685_v63 }
  0x6c   :  { %v257_v21 = vand.u32 4294901760, %v2687_v2  ;;  %v264_v22 = vand.u32 4294901760, %v2690_v3  ;;  %v271_v23 = vand.u32 4294901760, %v2692_v4  ;;  %v278_v24 = vand.u32 4294901760, %v2694_v5 }
  0x6d   :  { %2060 = vmatpush3.bf16.msra.mxu0 %v2634_v31  ;;  %2204 = vmatpush3.bf16.msra.mxu1 %v2634_v31  ;;  %v285_v26 = vand.u32 4294901760, %v2696_v6  ;;  %v292_v27 = vand.u32 4294901760, %v2700_v9  ;;  %v299_v28 = vand.u32 4294901760, %v2702_v10  ;;  %v2722_v29 = vpack.c.bf16 %v201_v48, %v194_v47 }
  0x6e   :  { %2061 = vmatprep.subr.bf16.mxu0 %v2517_v0  ;;  %2205 = vmatprep.subr.bf16.mxu1 %v2517_v0  ;;  %v2724_v30 = vpack.c.bf16 %v215_v55, %v208_v54  ;;  %v2727_v32 = vpack.c.bf16 %v229_v8, %v222_v59  ;;  %v2729_v33 = vpack.c.bf16 %v243_v18, %v236_v16  ;;  %v185_v41 = vand.u32 4294901760, %v184_v17 }
  0x6f   :  { %v2731_v34 = vpack.c.bf16 %v257_v21, %v250_v19  ;;  %v2733_v38 = vpack.c.bf16 %v271_v23, %v264_v22  ;;  %v2736_v39 = vpack.c.bf16 %v285_v26, %v278_v24  ;;  %v2738_v40 = vpack.c.bf16 %v299_v28, %v292_v27 }
  0x70   :  { %v223_v42 = vsub.f32 %v2655_v49, %v222_v59  ;;  %v2744_v43 = vpack.c.bf16 %v203_v14, %v196_v11  ;;  %v210_v47 = vand.u32 4294901760, %v209_v7  ;;  %v217_v48 = vand.u32 4294901760, %v216_v15 }
  0x71   :  { %2063 = vmatpush3.bf16.msra.mxu0 %v2651_v46  ;;  %2207 = vmatpush3.bf16.msra.mxu1 %v2651_v46  ;;  %v230_v54 = vsub.f32 %v2672_v56, %v229_v8  ;;  %v237_v55 = vsub.f32 %v2678_v60, %v236_v16  ;;  %v244_v7 = vsub.f32 %v2683_v62, %v243_v18 }
  0x72   :  { %2064 = vmatprep.subr.bf16.mxu0 %v2517_v0  ;;  %2208 = vmatprep.subr.bf16.mxu1 %v2517_v0  ;;  %v2752_v57 = vpack.c.bf16 %v217_v48, %v210_v47  ;;  %v224_v58 = vand.u32 4294901760, %v223_v42  ;;  %v251_v15 = vsub.f32 %v2685_v63, %v250_v19  ;;  %v258_v16 = vsub.f32 %v2687_v2, %v257_v21 }
  0x73   :  { %v231_v59 = vand.u32 4294901760, %v230_v54  ;;  %v238_v8 = vand.u32 4294901760, %v237_v55  ;;  %v245_v14 = vand.u32 4294901760, %v244_v7  ;;  %v265_v17 = vsub.f32 %v2690_v3, %v264_v22 }
  0x74   :  { %v259_v42 = vand.u32 4294901760, %v258_v16  ;;  %v272_v47 = vsub.f32 %v2692_v4, %v271_v23  ;;  %v279_v48 = vsub.f32 %v2694_v5, %v278_v24  ;;  %v286_v22 = vsub.f32 %v2696_v6, %v285_v26 }
  0x75   :  { %2066 = vmatpush3.bf16.msra.mxu0 %v2664_v51  ;;  %2210 = vmatpush3.bf16.msra.mxu1 %v2664_v51  ;;  %v2759_v11 = vpack.c.bf16 %v231_v59, %v224_v58  ;;  %v2766_v18 = vpack.c.bf16 %v245_v14, %v238_v8  ;;  %v266_v21 = vand.u32 4294901760, %v265_v17  ;;  %v293_v55 = vsub.f32 %v2700_v9, %v292_v27 }
  0x76   :  { %2067 = vmatprep.subr.bf16.mxu0 %v2517_v0  ;;  %2211 = vmatprep.subr.bf16.mxu1 %v2517_v0  ;;  %v273_v54 = vand.u32 4294901760, %v272_v47  ;;  %v280_v23 = vand.u32 4294901760, %v279_v48  ;;  %v287_v59 = vand.u32 4294901760, %v286_v22  ;;  %v300_v24 = vsub.f32 %v2702_v10, %v299_v28 }
  0x77   :  { %v294_v8 = vand.u32 4294901760, %v293_v55  ;;  %v2793_v28 = vpack.c.bf16 %v2638_v36, %v2636_v35  ;;  %v2800_v14 = vpack.c.bf16 %v2648_v45, %v2646_v44  ;;  %v2808_v35 = vpack.c.bf16 %v2672_v56, %v2655_v49 }
  0x78   :  { %v2778_v58 = vpack.c.bf16 %v273_v54, %v266_v21  ;;  %v2783_v7 = vpack.c.bf16 %v287_v59, %v280_v23  ;;  %v301_v26 = vand.u32 4294901760, %v300_v24  ;;  %v2814_v36 = vpack.c.bf16 %v2683_v62, %v2678_v60 }
  0x79   :  { %2069 = vmatpush3.bf16.msra.mxu0 %v2666_v52  ;;  %2213 = vmatpush3.bf16.msra.mxu1 %v2666_v52  ;;  %v2820_v44 = vpack.c.bf16 %v2687_v2, %v2685_v63  ;;  %v2826_v45 = vpack.c.bf16 %v2692_v4, %v2690_v3  ;;  %v2832_v49 = vpack.c.bf16 %v2696_v6, %v2694_v5 }
  0x7a   :  { %2070 = vmatprep.subr.bf16.mxu0 %v2517_v0  ;;  %2214 = vmatprep.subr.bf16.mxu1 %v2517_v0  ;;  %v2787_v27 = vpack.c.bf16 %v301_v26, %v294_v8  ;;  %v2838_v56 = vpack.c.bf16 %v2702_v10, %v2700_v9 }
  0x7d   :  { %2072 = vmatpush3.bf16.msra.mxu0 %v2668_v53  ;;  %2216 = vmatpush3.bf16.msra.mxu1 %v2668_v53 }
  0x7e   :  { %2073 = vmatprep.subr.bf16.mxu0 %v2517_v0  ;;  %2217 = vmatprep.subr.bf16.mxu1 %v2517_v0 }
  0x80   :  { %1662 = vmatmul.mubr.f32.vlgmr.msra.gmra.mrb[0].mxu0 %v185_v41  ;;  %v252_v41 = vand.u32 4294901760, %v251_v15 }
  0x81   :  { %2075 = vmatpush3.bf16.msra.mxu0 %v2744_v43  ;;  %1696 = vmatprep.mubr.msk.f32.mxu0 %vm2518_vm0, %v2519_v1 }
  0x82   :  { %2076 = vmatprep.subr.bf16.mxu0 %v2517_v0  ;;  %v2772_v19 = vpack.c.bf16 %v259_v42, %v252_v41 }
  0x85   :  { %2078 = vmatpush3.bf16.msra.mxu0 %v2752_v57 }
  0x86   :  { %2079 = vmatprep.subr.bf16.mxu0 %v2517_v0 }
  0x89   :  { %2081 = vmatpush3.bf16.msra.mxu0 %v2759_v11 }
  0x8a   :  { %2082 = vmatprep.subr.bf16.mxu0 %v2517_v0 }
  0x8d   :  { %2084 = vmatpush3.bf16.msra.mxu0 %v2766_v18 }
  0x8e   :  { %2085 = vmatprep.subr.bf16.mxu0 %v2517_v0 }
  0x91   :  { %2087 = vmatpush3.bf16.msra.mxu0 %v2772_v19 }
  0x92   :  { %2088 = vmatprep.subr.bf16.mxu0 %v2517_v0 }
  0x95   :  { %2090 = vmatpush3.bf16.msra.mxu0 %v2778_v58 }
  0x96   :  { %2091 = vmatprep.subr.bf16.mxu0 %v2517_v0 }
  0x99   :  { %2093 = vmatpush3.bf16.msra.mxu0 %v2783_v7 }
  0x9a   :  { %2094 = vmatprep.subr.bf16.mxu0 %v2517_v0 }
  0x9d   :  { %2096 = vmatpush3.bf16.msra.mxu0 %v2787_v27 }
  0x9e   :  { %2097 = vmatprep.subr.bf16.mxu0 %v2517_v0 }
  0xa0   :  { %1697 = vmatmul.mubr.f32.vlgmr.msra.gmra.mrb[0].mxu0 %v2643_v37 }
  0xa1   :  { %2099 = vmatpush3.bf16.msra.mxu0 %v2793_v28  ;;  %1731 = vmatprep.mubr.msk.f32.mxu0 %vm2518_vm0, %v2519_v1 }
  0xa2   :  { %2100 = vmatprep.subr.bf16.mxu0 %v2517_v0 }
  0xa5   :  { %2102 = vmatpush3.bf16.msra.mxu0 %v2800_v14 }
  0xa6   :  { %2103 = vmatprep.subr.bf16.mxu0 %v2517_v0 }
  0xa9   :  { %2105 = vmatpush3.bf16.msra.mxu0 %v2808_v35 }
  0xaa   :  { %2106 = vmatprep.subr.bf16.mxu0 %v2517_v0 }
  0xad   :  { %2108 = vmatpush3.bf16.msra.mxu0 %v2814_v36 }
  0xae   :  { %2109 = vmatprep.subr.bf16.mxu0 %v2517_v0 }
  0xb1   :  { %2111 = vmatpush3.bf16.msra.mxu0 %v2820_v44 }
  0xb2   :  { %2112 = vmatprep.subr.bf16.mxu0 %v2517_v0 }
  0xb5   :  { %2114 = vmatpush3.bf16.msra.mxu0 %v2826_v45 }
  0xb6   :  { %2115 = vmatprep.subr.bf16.mxu0 %v2517_v0 }
  0xb9   :  { %2117 = vmatpush3.bf16.msra.mxu0 %v2832_v49 }
  0xba   :  { %2118 = vmatprep.subr.bf16.mxu0 %v2517_v0 }
  0xbd   :  { %2120 = vmatpush3.bf16.msra.mxu0 %v2838_v56 }
  0xbe   :  { %2121 = vmatprep.subr.bf16.mxu0 %v2517_v0 }
  0xc0   :  { %1732 = vmatmul.mubr.f32.vlgmr.msra.gmra.mrb[0].mxu0 %v2661_v50 }
  0xc1   :  { %2123 = vmatpush3.bf16.msra.mxu0 %v2617_v12  ;;  %1766 = vmatprep.mubr.msk.f32.mxu0 %vm2518_vm0, %v2519_v1 }
  0xc2   :  { %2124 = vmatprep.subr.bf16.mxu0 %v2517_v0 }
  0xc5   :  { %2126 = vmatpush3.bf16.msra.mxu0 %v2620_v13 }
  0xc6   :  { %2127 = vmatprep.subr.bf16.mxu0 %v2517_v0 }
  0xc9   :  { %2129 = vmatpush3.bf16.msra.mxu0 %v2626_v20 }
  0xca   :  { %2130 = vmatprep.subr.bf16.mxu0 %v2517_v0 }
  0xcd   :  { %2132 = vmatpush3.bf16.msra.mxu0 %v2634_v31 }
  0xce   :  { %2133 = vmatprep.subr.bf16.mxu0 %v2517_v0 }
  0xd1   :  { %2135 = vmatpush3.bf16.msra.mxu0 %v2651_v46 }
  0xd2   :  { %2136 = vmatprep.subr.bf16.mxu0 %v2517_v0 }
  0xd5   :  { %2138 = vmatpush3.bf16.msra.mxu0 %v2664_v51 }
  0xd6   :  { %2139 = vmatprep.subr.bf16.mxu0 %v2517_v0 }
  0xd9   :  { %2141 = vmatpush3.bf16.msra.mxu0 %v2666_v52 }
  0xda   :  { %2142 = vmatprep.subr.bf16.mxu0 %v2517_v0 }
  0xdd   :  { %2144 = vmatpush3.bf16.msra.mxu0 %v2668_v53 }
  0xde   :  { %2145 = vmatprep.subr.bf16.mxu0 %v2517_v0 }
  0xe0   :  { %1767 = vmatmul.mubr.f32.vlgmr.msra.gmra.mrb[0].mxu0 %v183_v61 }
  0xe1   :  { %2147 = vmatpush3.bf16.msra.mxu0 %v2722_v29  ;;  %1801 = vmatprep.mubr.msk.f32.mxu0 %vm2518_vm0, %v2519_v1 }
  0xe2   :  { %2148 = vmatprep.subr.bf16.mxu0 %v2517_v0 }
  0xe5   :  { %2150 = vmatpush3.bf16.msra.mxu0 %v2724_v30 }
  0xe6   :  { %2151 = vmatprep.subr.bf16.mxu0 %v2517_v0 }
  0xe9   :  { %2153 = vmatpush3.bf16.msra.mxu0 %v2727_v32 }
  0xea   :  { %2154 = vmatprep.subr.bf16.mxu0 %v2517_v0 }
  0xed   :  { %2156 = vmatpush3.bf16.msra.mxu0 %v2729_v33 }
  0xee   :  { %2157 = vmatprep.subr.bf16.mxu0 %v2517_v0 }
  0xf1   :  { %2159 = vmatpush3.bf16.msra.mxu0 %v2731_v34 }
  0xf2   :  { %2160 = vmatprep.subr.bf16.mxu0 %v2517_v0 }
  0xf5   :  { %2162 = vmatpush3.bf16.msra.mxu0 %v2733_v38 }
  0xf6   :  { %2163 = vmatprep.subr.bf16.mxu0 %v2517_v0 }
  0xf9   :  { %2165 = vmatpush3.bf16.msra.mxu0 %v2736_v39 }
  0xfa   :  { %2166 = vmatprep.subr.bf16.mxu0 %v2517_v0 }
  0xfd   :  { %2168 = vmatpush3.bf16.msra.mxu0 %v2738_v40 }
  0xfe   :  { %2169 = vmatprep.subr.bf16.mxu0 %v2517_v0 }
 0x100   :  { %1802 = vmatmul.mubr.f32.vlgmr.msra.gmra.mrb[0].mxu0 %v2643_v37 }
 0x101   :  { %2171 = vmatpush3.bf16.msra.mxu0 %v2617_v12  ;;  %1836 = vmatprep.mubr.msk.f32.mxu0 %vm2518_vm0, %v2519_v1 }
 0x102   :  { %2172 = vmatprep.subr.bf16.mxu0 %v2517_v0 }
 0x105   :  { %2174 = vmatpush3.bf16.msra.mxu0 %v2620_v13 }
 0x106   :  { %2175 = vmatprep.subr.bf16.mxu0 %v2517_v0 }
 0x109   :  { %2177 = vmatpush3.bf16.msra.mxu0 %v2626_v20 }
 0x10a   :  { %2178 = vmatprep.subr.bf16.mxu0 %v2517_v0 }
 0x10d   :  { %2180 = vmatpush3.bf16.msra.mxu0 %v2634_v31 }
 0x10e   :  { %2181 = vmatprep.subr.bf16.mxu0 %v2517_v0 }
 0x111   :  { %2183 = vmatpush3.bf16.msra.mxu0 %v2651_v46 }
 0x112   :  { %2184 = vmatprep.subr.bf16.mxu0 %v2517_v0 }
 0x115   :  { %2186 = vmatpush3.bf16.msra.mxu0 %v2664_v51 }
 0x116   :  { %2187 = vmatprep.subr.bf16.mxu0 %v2517_v0 }
 0x119   :  { %2189 = vmatpush3.bf16.msra.mxu0 %v2666_v52 }
 0x11a   :  { %2190 = vmatprep.subr.bf16.mxu0 %v2517_v0 }
 0x11d   :  { %2192 = vmatpush3.bf16.msra.mxu0 %v2668_v53 }
 0x120   :  { %1837 = vmatmul.mubr.f32.vlgmr.msra.gmra.mrb[0].mxu0 %v2643_v37 }
 0x1f3   :  { %v737_v50 = vpop.f32.mrb[0].mxu0 }
 0x1f4   :  { %v741_v60 = vmul.f32 0.03125, %v737_v50  ;;  %v1838_v61 = vpop.f32.mrb[1].mxu0 }
 0x1f6   :  { %v2902_v62 = vsub.f32 %v2630_v25, %v741_v60 }
 0x1f8   :  { %v743_v63 = vmul.f32 %v2902_v62, %v2902_v62 }
 0x1fa   :  { %v2906_v2 = vand.u32 4294901760, %v743_v63 }
 0x1fc   :  { %v826_v3 = vsub.f32 %v743_v63, %v2906_v2 }
 0x1fe   :  { %v827_v4 = vand.u32 4294901760, %v826_v3 }
 0x200   :  { %v828_v5 = vsub.f32 %v826_v3, %v827_v4 }
 0x202   :  { %v829_v6 = vand.u32 4294901760, %v828_v5 }
 0x204   :  { %1872 = vmatmul.mubr.f32.vlgmr.msra.gmra.mrb[0].mxu1 %v829_v6 }
 0x205   :  { %2219 = vmatpush3.bf16.msra.mxu1 %v2744_v43  ;;  %1906 = vmatprep.mubr.msk.f32.mxu1 %vm2518_vm0, %v2519_v1 }
 0x206   :  { %2220 = vmatprep.subr.bf16.mxu1 %v2517_v0 }
 0x209   :  { %2222 = vmatpush3.bf16.msra.mxu1 %v2752_v57 }
 0x20a   :  { %2223 = vmatprep.subr.bf16.mxu1 %v2517_v0 }
 0x20d   :  { %2225 = vmatpush3.bf16.msra.mxu1 %v2759_v11 }
 0x20e   :  { %2226 = vmatprep.subr.bf16.mxu1 %v2517_v0 }
 0x211   :  { %2228 = vmatpush3.bf16.msra.mxu1 %v2766_v18 }
 0x212   :  { %2229 = vmatprep.subr.bf16.mxu1 %v2517_v0 }
 0x215   :  { %2231 = vmatpush3.bf16.msra.mxu1 %v2772_v19 }
 0x216   :  { %2232 = vmatprep.subr.bf16.mxu1 %v2517_v0 }
 0x219   :  { %2234 = vmatpush3.bf16.msra.mxu1 %v2778_v58 }
 0x21a   :  { %2235 = vmatprep.subr.bf16.mxu1 %v2517_v0 }
 0x21d   :  { %2237 = vmatpush3.bf16.msra.mxu1 %v2783_v7 }
 0x21e   :  { %2238 = vmatprep.subr.bf16.mxu1 %v2517_v0 }
 0x221   :  { %2240 = vmatpush3.bf16.msra.mxu1 %v2787_v27 }
 0x222   :  { %2241 = vmatprep.subr.bf16.mxu1 %v2517_v0 }
 0x224   :  { %1907 = vmatmul.mubr.f32.vlgmr.msra.gmra.mrb[0].mxu1 %v2906_v2 }
 0x225   :  { %2243 = vmatpush3.bf16.msra.mxu1 %v2793_v28  ;;  %1941 = vmatprep.mubr.msk.f32.mxu1 %vm2518_vm0, %v2519_v1 }
 0x226   :  { %2244 = vmatprep.subr.bf16.mxu1 %v2517_v0 }
 0x229   :  { %2246 = vmatpush3.bf16.msra.mxu1 %v2800_v14 }
 0x22a   :  { %2247 = vmatprep.subr.bf16.mxu1 %v2517_v0 }
 0x22d   :  { %2249 = vmatpush3.bf16.msra.mxu1 %v2808_v35 }
 0x22e   :  { %2250 = vmatprep.subr.bf16.mxu1 %v2517_v0 }
 0x231   :  { %2252 = vmatpush3.bf16.msra.mxu1 %v2814_v36 }
 0x232   :  { %2253 = vmatprep.subr.bf16.mxu1 %v2517_v0 }
 0x235   :  { %2255 = vmatpush3.bf16.msra.mxu1 %v2820_v44 }
 0x236   :  { %2256 = vmatprep.subr.bf16.mxu1 %v2517_v0 }
 0x239   :  { %2258 = vmatpush3.bf16.msra.mxu1 %v2826_v45 }
 0x23a   :  { %2259 = vmatprep.subr.bf16.mxu1 %v2517_v0 }
 0x23d   :  { %2261 = vmatpush3.bf16.msra.mxu1 %v2832_v49 }
 0x23e   :  { %2262 = vmatprep.subr.bf16.mxu1 %v2517_v0 }
 0x241   :  { %2264 = vmatpush3.bf16.msra.mxu1 %v2838_v56 }
 0x242   :  { %2265 = vmatprep.subr.bf16.mxu1 %v2517_v0 }
 0x244   :  { %1942 = vmatmul.mubr.f32.vlgmr.msra.gmra.mrb[0].mxu1 %v826_v3 }
 0x245   :  { %2267 = vmatpush3.bf16.msra.mxu1 %v2617_v12  ;;  %1976 = vmatprep.mubr.msk.f32.mxu1 %vm2518_vm0, %v2519_v1 }
 0x246   :  { %2268 = vmatprep.subr.bf16.mxu1 %v2517_v0 }
 0x249   :  { %2270 = vmatpush3.bf16.msra.mxu1 %v2620_v13 }
 0x24a   :  { %2271 = vmatprep.subr.bf16.mxu1 %v2517_v0 }
 0x24d   :  { %2273 = vmatpush3.bf16.msra.mxu1 %v2626_v20 }
 0x24e   :  { %2274 = vmatprep.subr.bf16.mxu1 %v2517_v0 }
 0x251   :  { %2276 = vmatpush3.bf16.msra.mxu1 %v2634_v31 }
 0x252   :  { %2277 = vmatprep.subr.bf16.mxu1 %v2517_v0 }
 0x255   :  { %2279 = vmatpush3.bf16.msra.mxu1 %v2651_v46 }
 0x256   :  { %2280 = vmatprep.subr.bf16.mxu1 %v2517_v0 }
 0x259   :  { %2282 = vmatpush3.bf16.msra.mxu1 %v2664_v51 }
 0x25a   :  { %2283 = vmatprep.subr.bf16.mxu1 %v2517_v0 }
 0x25d   :  { %2285 = vmatpush3.bf16.msra.mxu1 %v2666_v52 }
 0x25e   :  { %2286 = vmatprep.subr.bf16.mxu1 %v2517_v0 }
 0x261   :  { %2288 = vmatpush3.bf16.msra.mxu1 %v2668_v53 }
 0x262   :  { %2289 = vmatprep.subr.bf16.mxu1 %v2517_v0 }
 0x264   :  { %1977 = vmatmul.mubr.f32.vlgmr.msra.gmra.mrb[0].mxu1 %v827_v4 }
 0x265   :  { %2291 = vmatpush3.bf16.msra.mxu1 %v2722_v29  ;;  %2011 = vmatprep.mubr.msk.f32.mxu1 %vm2518_vm0, %v2519_v1 }
 0x266   :  { %2292 = vmatprep.subr.bf16.mxu1 %v2517_v0 }
 0x269   :  { %2294 = vmatpush3.bf16.msra.mxu1 %v2724_v30 }
 0x26a   :  { %2295 = vmatprep.subr.bf16.mxu1 %v2517_v0 }
 0x26d   :  { %2297 = vmatpush3.bf16.msra.mxu1 %v2727_v32 }
 0x26e   :  { %2298 = vmatprep.subr.bf16.mxu1 %v2517_v0 }
 0x271   :  { %2300 = vmatpush3.bf16.msra.mxu1 %v2729_v33 }
 0x272   :  { %2301 = vmatprep.subr.bf16.mxu1 %v2517_v0 }
 0x275   :  { %2303 = vmatpush3.bf16.msra.mxu1 %v2731_v34 }
 0x276   :  { %2304 = vmatprep.subr.bf16.mxu1 %v2517_v0 }
 0x279   :  { %2306 = vmatpush3.bf16.msra.mxu1 %v2733_v38 }
 0x27a   :  { %2307 = vmatprep.subr.bf16.mxu1 %v2517_v0 }
 0x27d   :  { %2309 = vmatpush3.bf16.msra.mxu1 %v2736_v39 }
 0x27e   :  { %2310 = vmatprep.subr.bf16.mxu1 %v2517_v0 }
 0x281   :  { %2312 = vmatpush3.bf16.msra.mxu1 %v2738_v40 }
 0x282   :  { %2313 = vmatprep.subr.bf16.mxu1 %v2517_v0 }
 0x284   :  { %2012 = vmatmul.mubr.f32.vlgmr.msra.gmra.mrb[0].mxu1 %v2906_v2 }
 0x285   :  { %2315 = vmatpush3.bf16.msra.mxu1 %v2617_v12  ;;  %2046 = vmatprep.mubr.msk.f32.mxu1 %vm2518_vm0, %v2519_v1 }
 0x286   :  { %2316 = vmatprep.subr.bf16.mxu1 %v2517_v0 }
 0x289   :  { %2318 = vmatpush3.bf16.msra.mxu1 %v2620_v13 }
 0x28a   :  { %2319 = vmatprep.subr.bf16.mxu1 %v2517_v0 }
 0x28d   :  { %2321 = vmatpush3.bf16.msra.mxu1 %v2626_v20 }
 0x28e   :  { %2322 = vmatprep.subr.bf16.mxu1 %v2517_v0 }
 0x291   :  { %2324 = vmatpush3.bf16.msra.mxu1 %v2634_v31  ;;  %v1423_v31 = vld [vmem:[#allocation7] ss:$0 sm:$0xff] }
 0x292   :  { %2325 = vmatprep.subr.bf16.mxu1 %v2517_v0 }
 0x295   :  { %2327 = vmatpush3.bf16.msra.mxu1 %v2651_v46  ;;  %v1424_v46 = vld [vmem:[#allocation8] ss:$0 sm:$0xff] }
 0x296   :  { %2328 = vmatprep.subr.bf16.mxu1 %v2517_v0 }
 0x299   :  { %2330 = vmatpush3.bf16.msra.mxu1 %v2664_v51 }
 0x29a   :  { %2331 = vmatprep.subr.bf16.mxu1 %v2517_v0 }
 0x29d   :  { %2333 = vmatpush3.bf16.msra.mxu1 %v2666_v52 }
 0x29e   :  { %2334 = vmatprep.subr.bf16.mxu1 %v2517_v0 }
 0x2a1   :  { %2336 = vmatpush3.bf16.msra.mxu1 %v2668_v53 }
 0x2a4   :  { %2047 = vmatmul.mubr.f32.vlgmr.msra.gmra.mrb[0].mxu1 %v2906_v2 }
 0x377   :  { %v1381_v1 = vpop.f32.mrb[0].mxu1 }
 0x378   :  { %v1385_v12 = vmul.f32 0.03125, %v1381_v1  ;;  %v2048_v13 = vpop.f32.mrb[1].mxu1 }
 0x37a   :  { %v1386_v20 = vadd.f32 1e-05, %v1385_v12 }
 0x37c   :  { %2368 = vrsqrt.f32 %v1386_v20 }
 0x386   :  { %v2369_v25 = vpop.eup %2368 }
 0x387   :  { %v1388_v37 = vmul.f32 %v2369_v25, %v2902_v62 }
 0x389   :  { %v1396_v51 = vmul.f32 %v1423_v31, %v1388_v37 }
 0x38b   :  { %v1404_v52 = vadd.f32 %v1424_v46, %v1396_v51 }
 0x38d   :  { %1405 = vst [vmem:[#allocation11] sm:$0xff] %v1404_v52 }
 0x38e   :  { %2491 = shalt.err (!%p2488_p2)
}
 0x38f   :  { %s2492_s30 = scalar_lea.hbm %s3019_s5, 128 }
 0x390   :  { %p2493_p3 = scmp.ne.s32.totalorder %s3019_s5, %s2492_s30  ;;  %p2496_p4 = scmp.lt.u32.totalorder %s2492_s30, %s3019_s5 }
 0x392   :  { %p2498_p5 = pnand %p2496_p4, %p2493_p3 }
 0x394   :  { %2501 = shalt.err (!%p2498_p5)
}
 0x395   :  { %1415 = dma.vmem_to_hbm [thread:$0]  %s1413_s28, 128, %s3019_s5, [#allocation4]  }
 0x396   :  { %2508 = dma.done.wait [#allocation4], 128  }
 0x397   :  { %2509 = vsyncadd [#allocation4], 4294967168 }
 0x398   :  { %1419 = vsyncpa [#allocation3], 1 }
 0x399   :  { %1420 = vsyncpa [#allocation6], 1 }
 0x39a   :  { %1421 = vsyncpa [#allocation9], 1 }
 0x39b   :  { %1422 = vsyncpa [#allocation4], 1 }

</bundles_post_ra>
